<compile_context>
chip_gen: v5e
topology: v5e:2x2
jax: 0.10.0
libtpu: 0.0.40
codegen_flags: <defaults>
</compile_context>

<pallas_src>
import functools

import jax
import jax.numpy as jnp
from jax.experimental import pallas as pl
from jax.experimental.pallas import tpu as pltpu

EPS = 1e-5
MOMENTUM = 0.9


def _bn_kernel(x_ref, params_ref, y_ref, psum_ref, *, C, mxu_reduce):
    """One (TR, HW) row-block per grid step (grid axis is fully parallel).

    x_ref      : (TR, HW)    input rows; global row r corresponds to (n, c) = divmod(r, C)
    params_ref : (8, C_pad)  row 0 = per-channel scale, row 1 = per-channel shift (rest zero)
    y_ref      : (TR, HW)    output rows
    psum_ref   : (8, C_pad)  per-block partial channel sums (value replicated over sublanes)
    """
    i = pl.program_id(0)
    TR = x_ref.shape[0]
    C_pad = params_ref.shape[1]

    x = x_ref[...]                                             # (TR, HW), native dtype
    # bf16 stays bf16 on the VPU (native on v6e/v7x); everything else computes in f32.
    cdtype = x.dtype if x.dtype == jnp.bfloat16 else jnp.float32

    # Row -> channel one-hot selector, generated in-kernel (no HBM side input).
    # Global row r = i*TR + local row; channel(r) = r % C.
    row_id = jax.lax.broadcasted_iota(jnp.int32, (TR, C_pad), 0) + i * TR
    chan_id = jax.lax.broadcasted_iota(jnp.int32, (TR, C_pad), 1)
    onehot = (chan_id == row_id % C).astype(jnp.float32)       # (TR, C_pad)

    # Per-row [scale, shift] via one small MXU matmul (a . b^T form); columns 2..7 are zero.
    sc_sh = jax.lax.dot_general(
        onehot, params_ref[...],
        dimension_numbers=(((1,), (1,)), ((), ())),
        preferred_element_type=jnp.float32)                    # (TR, 8)
    scale = sc_sh[:, 0:1].astype(cdtype)                       # (TR, 1)
    shift = sc_sh[:, 1:2].astype(cdtype)                       # (TR, 1)

    # Y = gamma * (x - moving_mean) / sqrt(moving_var + eps) + beta  ==  x*scale + shift
    y_ref[...] = (x.astype(cdtype) * scale + shift).astype(y_ref.dtype)

    # Per-block per-channel partial sums (feed the moving_mean update in the wrapper).
    if mxu_reduce:
        # Contract the row axis on the otherwise-idle MXU: (TR,HW) x (TR,C_pad) -> (HW,C_pad)
        chan_part = jax.lax.dot_general(
            x, onehot.astype(x.dtype),
            dimension_numbers=(((0,), (0,)), ((), ())),
            preferred_element_type=jnp.float32)                # (HW, C_pad)
        chan_sum = jnp.sum(chan_part, axis=0, keepdims=True)   # (1, C_pad)
    else:
        # Large-HW fallback (keeps the (HW, C_pad) f32 intermediate bounded): lane-reduce
        # rows first, then route rows -> channels through the one-hot (TR is small here).
        row_sum = jnp.sum(x.astype(jnp.float32), axis=1, keepdims=True)   # (TR, 1)
        chan_sum = jnp.sum(onehot * row_sum, axis=0, keepdims=True)       # (1, C_pad)

    psum_ref[...] = jnp.broadcast_to(chan_sum, psum_ref.shape)


def _per_buffer_budget_bytes():
    """Per-block-buffer tile budget. Larger tiles on v6e/v7x amortize the ~0.35us/step
    overhead; stay modest on v5e (16 MiB default scoped VMEM) and unknown chips."""
    try:
        kind = jax.devices()[0].device_kind.lower()
    except Exception:
        kind = ""
    if "v6" in kind or "v7" in kind:
        return 8 << 20
    return 3 << 20


def _pick_tiling(nc, hw, itemsize, budget_bytes):
    """Return (TR, NC_pad): row-tile size TR (divides NC_pad), TR*HW*itemsize <= budget."""
    bytes_per_row = max(1, hw * itemsize)
    max_rows = max(8, budget_bytes // bytes_per_row)
    if nc <= max_rows:
        return nc, nc
    step = max(8, 32 // max(1, itemsize))     # sublane packing: 8 (f32) / 16 (bf16) / 32 (i8)
    best = 0
    for tr in range(step, int(max_rows) + 1, step):
        if nc % tr == 0:
            best = tr
    if best:
        return best, nc
    # No exact divisor fits the budget: pad rows with zeros up to a multiple of TR.
    # Zero rows contribute nothing to the channel sums; their Y rows are sliced off.
    tr = max(step, (int(max_rows) // step) * step)
    nc_pad = int(pl.cdiv(nc, tr)) * tr
    return tr, nc_pad


def batch_norm_pallas(x_nchw, gamma, beta, moving_mean, moving_var,
                      eps=EPS, momentum=MOMENTUM):
    """Training-mode BatchNorm forward for NCHW input.

    x_nchw: (N, C, H, W); gamma/beta/moving_mean/moving_var: (1, C, 1, 1).
    Returns (Y (N,C,H,W), new_moving_mean (1,C,1,1), new_moving_var (1,C,1,1)).
    """
    # TODO(synk): num_dims == 2 (fully-connected) inputs use a different (N, C) layout;
    # only the 4-D NCHW path is implemented here.
    N, C, H, W = x_nchw.shape
    NC, HW = N * C, H * W
    # TODO(synk): if H*W is not a multiple of 128 (e.g. 7x7 / 14x14 feature maps), the Y
    # stores become lane-masked; repacking rows into a lane-dense view would help there.

    # Lane-dense, transpose-free layout: plain reshape of the native NCHW buffer.
    x2d = x_nchw.reshape(NC, HW)

    g = gamma.reshape(1, C).astype(jnp.float32)
    b = beta.reshape(1, C).astype(jnp.float32)
    mm = moving_mean.reshape(1, C).astype(jnp.float32)
    mv = moving_var.reshape(1, C).astype(jnp.float32)

    # Fold the (moving-stat) normalization into one per-channel scale/shift.
    scale = g * jax.lax.rsqrt(mv + eps)                        # (1, C)
    shift = b - mm * scale                                     # (1, C)

    C_pad = ((C + 127) // 128) * 128
    params = jnp.zeros((8, C_pad), jnp.float32)
    params = params.at[0, :C].set(scale[0])
    params = params.at[1, :C].set(shift[0])

    budget = _per_buffer_budget_bytes()
    itemsize = x2d.dtype.itemsize
    TR, NC_pad = _pick_tiling(NC, HW, itemsize, budget)
    if NC_pad != NC:
        x2d = jnp.pad(x2d, ((0, NC_pad - NC), (0, 0)))
    grid = (NC_pad // TR,)
    G = grid[0]

    # Keep the (HW, C_pad) f32 MXU intermediate <= ~1 MiB, otherwise use the fallback path.
    mxu_reduce = (HW * C_pad) <= (1 << 18)

    kernel = functools.partial(_bn_kernel, C=C, mxu_reduce=mxu_reduce)

    cost = pl.CostEstimate(
        flops=6 * NC_pad * HW,
        transcendentals=0,
        bytes_accessed=2 * NC_pad * HW * itemsize + (8 + G * 8) * C_pad * 4,
    )

    # in/out row blocks are double-buffered (~4 * budget of VMEM) plus the tiny params /
    # psum blocks -> set the scoped-VMEM limit explicitly (v5e's default is only 16 MiB).
    vmem_limit = int(4 * budget + (8 << 20))

    y2d, psums = pl.pallas_call(
        kernel,
        grid=grid,
        in_specs=[
            pl.BlockSpec((TR, HW), lambda i: (i, 0)),
            pl.BlockSpec((8, C_pad), lambda i: (0, 0)),
        ],
        out_specs=(
            pl.BlockSpec((TR, HW), lambda i: (i, 0)),
            pl.BlockSpec((None, 8, C_pad), lambda i: (i, 0, 0)),
        ),
        out_shape=(
            jax.ShapeDtypeStruct((NC_pad, HW), x_nchw.dtype),
            jax.ShapeDtypeStruct((G, 8, C_pad), jnp.float32),
        ),
        compiler_params=pltpu.CompilerParams(
            dimension_semantics=("parallel",),
            vmem_limit_bytes=vmem_limit,
        ),
        cost_estimate=cost,
    )(x2d, params)

    # Tiny epilogue in plain JAX: cross-block channel sums -> batch mean -> moving stats.
    chan_totals = jnp.sum(psums[:, 0, :C], axis=0)             # (C,)
    mean = (chan_totals / float(N * H * W)).reshape(1, C, 1, 1)
    new_mm = momentum * moving_mean.astype(jnp.float32) + (1.0 - momentum) * mean
    # Reference quirk kept exactly: moving_var is "updated" with itself (a no-op).
    new_mv = (momentum * mv + (1.0 - momentum) * mv).reshape(1, C, 1, 1)

    y = y2d[:NC].reshape(N, C, H, W)
    return y, new_mm, new_mv


def _reference_jax(x, gamma, beta, mm, mv, eps=EPS, momentum=MOMENTUM):
    mean = jnp.mean(x, axis=(0, 2, 3), keepdims=True)
    x_hat = (x - mm) / jnp.sqrt(mv + eps)
    y = gamma * x_hat + beta
    new_mm = momentum * mm + (1.0 - momentum) * mean
    new_mv = momentum * mv + (1.0 - momentum) * mv             # reference quirk kept
    return y, new_mm, new_mv


if __name__ == "__main__":
    key = jax.random.PRNGKey(0)
    N, C, H, W = 2, 4, 16, 16
    x = jax.random.normal(key, (N, C, H, W), dtype=jnp.float32)

    # deterministic parameter init matching BatchNorm.__init__(num_features=C, num_dims=4)
    gamma = jnp.ones((1, C, 1, 1), dtype=jnp.float32)
    beta = jnp.zeros((1, C, 1, 1), dtype=jnp.float32)
    moving_mean = jnp.zeros((1, C, 1, 1), dtype=jnp.float32)
    moving_var = jnp.ones((1, C, 1, 1), dtype=jnp.float32)

    y, new_mm, new_mv = batch_norm_pallas(x, gamma, beta, moving_mean, moving_var)
    jax.block_until_ready((y, new_mm, new_mv))

    y_ref, mm_ref, mv_ref = _reference_jax(x, gamma, beta, moving_mean, moving_var)
    assert jnp.allclose(y, y_ref, atol=1e-5, rtol=1e-5), "Y mismatch"
    assert jnp.allclose(new_mm, mm_ref, atol=1e-6, rtol=1e-6), "moving_mean mismatch"
    assert jnp.allclose(new_mv, mv_ref, atol=1e-6, rtol=1e-6), "moving_var mismatch"

    print("KERNEL_OK")
</pallas_src>

<mosaic_0001>
module attributes {stable_mosaic.version = 11 : i64} {
  func.func @_bn_kernel(%arg0: i32, %arg1: memref<8x256xf32, #tpu.memory_space<vmem>>, %arg2: memref<8x128xf32, #tpu.memory_space<vmem>>, %arg3: memref<8x256xf32, #tpu.memory_space<vmem>>, %arg4: memref<1x8x128xf32, #tpu.memory_space<vmem>>) attributes {dimension_semantics = [#tpu.dimension_semantics<parallel>], iteration_bounds = array<i64: 1>, scalar_prefetch = 0 : i64, scratch_operands = 0 : i64, tpu.core_type = #tpu.core_type<tc>, window_params = [{transform_indices = @transform_0, window_bounds = array<i64: 8, 256>}, {pipeline_mode = #tpu.pipeline_mode<synchronous>, transform_indices = @transform_1, window_bounds = array<i64: 8, 128>}, {transform_indices = @transform_2, window_bounds = array<i64: 8, 256>}, {transform_indices = @transform_3, window_bounds = array<i64: 1, 8, 128>}]} {
    %c0 = arith.constant 0 : index
    %c0_0 = arith.constant 0 : index
    %0 = vector.load %arg1[%c0, %c0_0] : memref<8x256xf32, #tpu.memory_space<vmem>>, vector<8x256xf32>
    %1 = tpu.iota {dimensions = array<i32: 0>} : vector<8x128xi32>
    %c8_i32 = arith.constant 8 : i32
    %2 = arith.muli %arg0, %c8_i32 : i32
    %3 = vector.broadcast %2 : i32 to vector<8x128xi32>
    %4 = arith.addi %1, %3 : vector<8x128xi32>
    %5 = tpu.iota {dimensions = array<i32: 1>} : vector<8x128xi32>
    %c4_i32 = arith.constant 4 : i32
    %c0_i32 = arith.constant 0 : i32
    %6 = arith.cmpi eq, %c4_i32, %c0_i32 : i32
    %c1_i32 = arith.constant 1 : i32
    %7 = arith.select %6, %c1_i32, %c4_i32 : i32
    %8 = vector.broadcast %7 : i32 to vector<8x128xi32>
    %9 = arith.remsi %4, %8 : vector<8x128xi32>
    %c0_i32_1 = arith.constant 0 : i32
    %10 = vector.broadcast %c0_i32_1 : i32 to vector<8x128xi32>
    %11 = arith.cmpi ne, %9, %10 : vector<8x128xi32>
    %c0_i32_2 = arith.constant 0 : i32
    %12 = vector.broadcast %c0_i32_2 : i32 to vector<8x128xi32>
    %13 = arith.cmpi slt, %9, %12 : vector<8x128xi32>
    %c0_i32_3 = arith.constant 0 : i32
    %14 = arith.cmpi slt, %7, %c0_i32_3 : i32
    %15 = vector.broadcast %14 : i1 to vector<8x128xi1>
    %16 = vector.broadcast %15 : vector<8x128xi1> to vector<8x128xi1>
    %17 = arith.xori %13, %16 : vector<8x128xi1>
    %18 = arith.andi %17, %11 : vector<8x128xi1>
    %19 = vector.broadcast %7 : i32 to vector<8x128xi32>
    %20 = arith.addi %9, %19 : vector<8x128xi32>
    %21 = arith.select %18, %20, %9 : vector<8x128xi1>, vector<8x128xi32>
    %22 = arith.cmpi eq, %5, %21 : vector<8x128xi32>
    %23 = arith.extui %22 : vector<8x128xi1> to vector<8x128xi32>
    %24 = arith.sitofp %23 : vector<8x128xi32> to vector<8x128xf32>
    %c0_4 = arith.constant 0 : index
    %c0_5 = arith.constant 0 : index
    %25 = vector.load %arg2[%c0_4, %c0_5] : memref<8x128xf32, #tpu.memory_space<vmem>>, vector<8x128xf32>
    %cst = arith.constant dense<0.000000e+00> : vector<8x8xf32>
    %26 = tpu.matmul %24, %25, %cst {dimension_numbers = #tpu.dot_dimension_numbers<[1], [1], [0], [0], [0, 0, 1, 0], [], []>} : vector<8x128xf32>, vector<8x128xf32>, vector<8x8xf32> -> vector<8x8xf32>
    %27 = vector.extract_strided_slice %26 {offsets = [0, 0], sizes = [8, 1], strides = [1, 1]} : vector<8x8xf32> to vector<8x1xf32>
    %28 = vector.extract_strided_slice %26 {offsets = [0, 1], sizes = [8, 1], strides = [1, 1]} : vector<8x8xf32> to vector<8x1xf32>
    %29 = vector.broadcast %27 : vector<8x1xf32> to vector<8x256xf32>
    %30 = arith.mulf %0, %29 : vector<8x256xf32>
    %31 = vector.broadcast %28 : vector<8x1xf32> to vector<8x256xf32>
    %32 = arith.addf %30, %31 : vector<8x256xf32>
    %c0_6 = arith.constant 0 : index
    %c0_7 = arith.constant 0 : index
    %33 = vector.load %arg3[%c0_6, %c0_7] : memref<8x256xf32, #tpu.memory_space<vmem>>, vector<8x256xf32>
    tpu.vector_store %arg3[%c0_6, %c0_7], %32 {strides = array<i32>} : memref<8x256xf32, #tpu.memory_space<vmem>>, vector<8x256xf32>,
    %cst_8 = arith.constant dense<0.000000e+00> : vector<256x128xf32>
    %34 = tpu.matmul %0, %24, %cst_8 {dimension_numbers = #tpu.dot_dimension_numbers<[0], [0], [1], [1], [0, 1, 1, 1], [], []>} : vector<8x256xf32>, vector<8x128xf32>, vector<256x128xf32> -> vector<256x128xf32>
    %cst_9 = arith.constant dense<0.000000e+00> : vector<128xf32>
    %35 = vector.multi_reduction <add>, %34, %cst_9 [0] : vector<256x128xf32> to vector<128xf32>
    %36 = vector.shape_cast %35 : vector<128xf32> to vector<1x128xf32>
    %37 = vector.shape_cast %36 : vector<1x128xf32> to vector<1x128xf32>
    %38 = vector.broadcast %37 : vector<1x128xf32> to vector<8x128xf32>
    %c0_10 = arith.constant 0 : index
    %c0_11 = arith.constant 0 : index
    %c0_12 = arith.constant 0 : index
    %39 = vector.load %arg4[%c0_10, %c0_11, %c0_12] : memref<1x8x128xf32, #tpu.memory_space<vmem>>, vector<1x8x128xf32>
    %40 = vector.shape_cast %39 : vector<1x8x128xf32> to vector<8x128xf32>
    %41 = vector.shape_cast %38 : vector<8x128xf32> to vector<1x8x128xf32>
    tpu.vector_store %arg4[%c0_10, %c0_11, %c0_12], %41 {strides = array<i32>} : memref<1x8x128xf32, #tpu.memory_space<vmem>>, vector<1x8x128xf32>,
    return
  }
  func.func @transform_0(%arg0: i32) -> (i32, i32) {
    %c0_i32 = arith.constant 0 : i32
    %c0_i32_0 = arith.constant 0 : i32
    return %arg0, %c0_i32 : i32, i32
  }
  func.func @transform_1(%arg0: i32) -> (i32, i32) {
    %c0_i32 = arith.constant 0 : i32
    %c0_i32_0 = arith.constant 0 : i32
    %c0_i32_1 = arith.constant 0 : i32
    return %c0_i32, %c0_i32_0 : i32, i32
  }
  func.func @transform_2(%arg0: i32) -> (i32, i32) {
    %c0_i32 = arith.constant 0 : i32
    %c0_i32_0 = arith.constant 0 : i32
    return %arg0, %c0_i32 : i32, i32
  }
  func.func @transform_3(%arg0: i32) -> (i32, i32, i32) {
    %c0_i32 = arith.constant 0 : i32
    %c0_i32_0 = arith.constant 0 : i32
    %c0_i32_1 = arith.constant 0 : i32
    return %arg0, %c0_i32, %c0_i32_0 : i32, i32, i32
  }
}

</mosaic_0001>

<bundles_post_ra>
// kernel: tpu_custom_call.1
= control target key start
LH: loop header
LB: loop body
LE: loop exit
PB: predicated region body
PF: predicated region fallthrough
CT: control target
= control target key end

     0   :  { %9 = vsyncpa [#allocation3], 0  ;;  %s681_s0 = inlined_call_operand.hbm [shape: f32[8,256], index: 0, kind: input, shape index: {}]   ;;  %s682_s1 = inlined_call_operand.hbm [shape: f32[8,128], index: 1, kind: input, shape index: {}]   ;;  %s683_s2 = inlined_call_operand.hbm [shape: f32[8,256], index: 2, kind: output, shape index: {0}]   ;;  %s684_s3 = inlined_call_operand.hbm [shape: f32[1,8,128], index: 3, kind: output, shape index: {1}]  }
   0x1   :  { %10 = vsyncpa [#allocation6], 0 }
   0x2   :  { %11 = vsyncpa [#allocation4], 0 }
   0x3   :  { %12 = vsyncpa [#allocation9], 0  ;;  %s18_s14 = sshll.u32 %s681_s0, 4  ;;  %s602_s15 = smov [#allocation2]   ;;  %s19_s14 = int_to_ptr.hbm [resolvable:$true] %s18_s14 }
   0x4   :  { %s20_s16 = sshll.u32 %s602_s15, 4  ;;  %s29_s19 = sshll.u32 %s682_s1, 4  ;;  %s21_s16 = int_to_ptr.vmem [resolvable:$true] %s20_s16  ;;  %s30_s19 = int_to_ptr.hbm [resolvable:$true] %s29_s19 }
   0x5   :  { %23 = dma.hbm_to_vmem [thread:$0]  %s19_s14, 256, %s21_s16, [#allocation3]  }
   0x6   :  { %s603_s20 = smov [#allocation5]  }
   0x7   :  { %s31_s21 = sshll.u32 %s603_s20, 4  ;;  %s32_s21 = int_to_ptr.vmem [resolvable:$true] %s31_s21 }
   0x8   :  { %34 = dma.hbm_to_vmem [thread:$0]  %s30_s19, 128, %s32_s21, [#allocation6]  }
   0x9   :  { %594 = dma.done.wait [#allocation3], 256  }
   0xa   :  { %595 = vsyncadd [#allocation3], 4294967040 }
   0xb   :  { %596 = dma.done.wait [#allocation6], 128  }
   0xc   :  { %597 = vsyncadd [#allocation6], 4294967168  ;;  %v635_v0 = vld [vmem:[#allocation2] sm:$0xff]  ;;  %v67_v1 = vld [vmem:[#allocation5] sm:$0xff]  ;;  %v45_v2 = vlaneseq  ;;  %v604_v6 = vmov 1.0   ;;  %vm167_vm1 = vcmask 64512  }
   0xd   :  { %103 = vxpose.xlu0.b32.start.end [1/1] (short) %v635_v0, 128  ;;  %83 = vmatpush.xpose.msra.mxu0 %v67_v1  ;;  %v638_v7 = vld [vmem:[#allocation2 + $0x8] sm:$0xff]  ;;  %v605_v37 = vmov 0   ;;  %v606_v39 = vmov 1   ;;  %s607_s0 = smov [#allocation7]   ;;  %s422_s24 = sshll.u32 %s683_s2, 4  ;;  %s423_s24 = int_to_ptr.hbm [resolvable:$true] %s422_s24 }
   0xe   :  { %v46_v3 = vshrl.u32 %v45_v2, 7  ;;  %v51_v4 = vand.u32 127, %v45_v2  ;;  %495 = vset.pattern.permute.xlu1 %v605_v37  ;;  %s420_s1 = sshll.u32 %s607_s0, 4  ;;  %s608_s2 = smov [#allocation8]   ;;  %s421_s1 = int_to_ptr.vmem [resolvable:$true] %s420_s1 }
   0xf   :  { %s431_s25 = sshll.u32 %s608_s2, 4  ;;  %s433_s28 = sshll.u32 %s684_s3, 4  ;;  %s432_s25 = int_to_ptr.vmem [resolvable:$true] %s431_s25  ;;  %s434_s28 = int_to_ptr.hbm [resolvable:$true] %s433_s28 }
  0x10   :  { %v56_v5 = vand.u32 3, %v46_v3 }
  0x12   :  { %vm64_vm0 = vcmp.eq.s32.totalorder %v51_v4, %v56_v5 }
  0x13   :  { %450 = vmatmul.msk.f32.vlgmr.msra.gmra.mxu0 %vm64_vm0, %v604_v6  ;;  %484 = vmatpush.msk.msra.mxu1 %vm64_vm0, %v604_v6 }
  0x14   :  { %451 = vmatpush.msk.msrb.mxu0 %vm64_vm0, %v604_v6  ;;  %485 = vmatpush.msk.msra.mxu2 %vm64_vm0, %v604_v6 }
  0x15   :  { %486 = vmatpush.msk.msra.mxu3 %vm64_vm0, %v604_v6 }
  0x8d   :  { %135 = vxpose.xlu0.b32.start.end [1/1] (short) %v638_v7, 128 }
  0x90   :  { %v85_v36 = vpop.f32.mrf.mxu0 }
  0x91   :  { %90 = vperm.xlu1 %495, %v85_v36  }
  0x99   :  { %496 = vset.pattern.permute.xlu1 %v606_v39 }
  0x9a   :  { %96 = vperm.xlu1 %496, %v85_v36  }
  0xb1   :  { %v119_v8 = vpop.trf.xlu0 }
  0xb2   :  { %452 = vmatmul.msk.f32.vlgmr.msrb.gmra.mxu0 %vm167_vm1, %v119_v8 }
  0xb9   :  { %v120_v9 = vpop.trf.xlu0 }
  0xba   :  { %453 = vmatmul.msk.f32.gmra.mxu0 %vm167_vm1, %v120_v9 }
  0xc1   :  { %v121_v10 = vpop.trf.xlu0 }
  0xc2   :  { %454 = vmatmul.msk.f32.gmra.mxu0 %vm167_vm1, %v121_v10 }
  0xc9   :  { %v122_v11 = vpop.trf.xlu0 }
  0xca   :  { %455 = vmatmul.msk.f32.gmra.mxu0 %vm167_vm1, %v122_v11 }
  0xd1   :  { %v123_v12 = vpop.trf.xlu0 }
  0xd2   :  { %456 = vmatmul.msk.f32.gmra.mxu0 %vm167_vm1, %v123_v12 }
  0xd9   :  { %v124_v13 = vpop.trf.xlu0 }
  0xda   :  { %457 = vmatmul.msk.f32.vlgmr.msra.gmra.mxu1 %vm167_vm1, %v124_v13 }
  0xe1   :  { %v125_v14 = vpop.trf.xlu0 }
  0xe2   :  { %458 = vmatmul.msk.f32.gmra.mxu1 %vm167_vm1, %v125_v14 }
  0xe9   :  { %v126_v15 = vpop.trf.xlu0 }
  0xea   :  { %459 = vmatmul.msk.f32.gmra.mxu1 %vm167_vm1, %v126_v15 }
  0xf1   :  { %v127_v16 = vpop.trf.xlu0 }
  0xf2   :  { %460 = vmatmul.msk.f32.gmra.mxu1 %vm167_vm1, %v127_v16 }
  0xf4   :  { %497 = vset.pattern.permute.xlu0 %v606_v39 }
  0xf9   :  { %v128_v17 = vpop.trf.xlu0 }
  0xfa   :  { %461 = vmatmul.msk.f32.gmra.mxu1 %vm167_vm1, %v128_v17 }
 0x101   :  { %v129_v18 = vpop.trf.xlu0 }
 0x102   :  { %462 = vmatmul.msk.f32.gmra.mxu1 %vm167_vm1, %v129_v18 }
 0x103   :  { %v91_v16 = vpop.permute.xlu1 %90 }
 0x109   :  { %v130_v19 = vpop.trf.xlu0 }
 0x10a   :  { %463 = vmatmul.msk.f32.gmra.mxu1 %vm167_vm1, %v130_v19 }
 0x111   :  { %v131_v20 = vpop.trf.xlu0 }
 0x112   :  { %464 = vmatmul.msk.f32.gmra.mxu1 %vm167_vm1, %v131_v20 }
 0x119   :  { %v132_v21 = vpop.trf.xlu0 }
 0x11a   :  { %465 = vmatmul.msk.f32.gmra.mxu1 %vm167_vm1, %v132_v21 }
 0x121   :  { %v133_v22 = vpop.trf.xlu0 }
 0x122   :  { %466 = vmatmul.msk.f32.vlgmr.msra.gmra.mxu2 %vm167_vm1, %v133_v22  ;;  %v93_v22 = vmul.f32 %v91_v16, %v635_v0 }
 0x129   :  { %v134_v23 = vpop.trf.xlu0 }
 0x12a   :  { %467 = vmatmul.msk.f32.gmra.mxu2 %vm167_vm1, %v134_v23  ;;  %v94_v23 = vmul.f32 %v91_v16, %v638_v7 }
 0x12f   :  { %v281_v47 = vpop.f32.mrf.mxu0 }
 0x131   :  { %v151_v24 = vpop.trf.xlu0 }
 0x132   :  { %468 = vmatmul.msk.f32.gmra.mxu2 %vm167_vm1, %v151_v24 }
 0x137   :  { %v284_v50 = vpop.f32.mrf.mxu0 }
 0x138   :  { %v377_v59 = vadd.f32 %v284_v50, %v281_v47 }
 0x139   :  { %v152_v25 = vpop.trf.xlu0 }
 0x13a   :  { %469 = vmatmul.msk.f32.gmra.mxu2 %vm167_vm1, %v152_v25 }
 0x13f   :  { %v287_v53 = vpop.f32.mrf.mxu0 }
 0x140   :  { %v378_v61 = vadd.f32 %v377_v59, %v287_v53 }
 0x141   :  { %v153_v26 = vpop.trf.xlu0 }
 0x142   :  { %470 = vmatmul.msk.f32.gmra.mxu2 %vm167_vm1, %v153_v26 }
 0x147   :  { %v290_v56 = vpop.f32.mrf.mxu0 }
 0x148   :  { %v379_v1 = vadd.f32 %v378_v61, %v290_v56 }
 0x149   :  { %v154_v27 = vpop.trf.xlu0 }
 0x14a   :  { %471 = vmatmul.msk.f32.gmra.mxu2 %vm167_vm1, %v154_v27  ;;  %v97_v27 = vpop.permute.xlu1 %96 }
 0x14f   :  { %v293_v62 = vpop.f32.mrf.mxu0 }
 0x150   :  { %v380_v2 = vadd.f32 %v379_v1, %v293_v62 }
 0x151   :  { %v155_v28 = vpop.trf.xlu0 }
 0x152   :  { %472 = vmatmul.msk.f32.gmra.mxu2 %vm167_vm1, %v155_v28  ;;  %v99_v28 = vadd.f32 %v97_v27, %v93_v22 }
 0x154   :  { %101 = vst [vmem:[#allocation7] sm:$0xff] %v99_v28 }
 0x157   :  { %v296_v43 = vpop.f32.mrf.mxu1 }
 0x158   :  { %v381_v3 = vadd.f32 %v380_v2, %v296_v43 }
 0x159   :  { %v156_v29 = vpop.trf.xlu0 }
 0x15a   :  { %473 = vmatmul.msk.f32.gmra.mxu2 %vm167_vm1, %v156_v29  ;;  %v100_v29 = vadd.f32 %v97_v27, %v94_v23 }
 0x15c   :  { %102 = vst [vmem:[#allocation7 + $0x8] sm:$0xff] %v100_v29 }
 0x15d   :  { %425 = dma.vmem_to_hbm [thread:$0]  %s421_s1, 256, %s423_s24, [#allocation4]  }
 0x15f   :  { %v299_v44 = vpop.f32.mrf.mxu1 }
 0x160   :  { %v382_v5 = vadd.f32 %v381_v3, %v299_v44 }
 0x161   :  { %v157_v30 = vpop.trf.xlu0 }
 0x162   :  { %474 = vmatmul.msk.f32.gmra.mxu2 %vm167_vm1, %v157_v30 }
 0x167   :  { %v302_v46 = vpop.f32.mrf.mxu1 }
 0x168   :  { %v383_v9 = vadd.f32 %v382_v5, %v302_v46 }
 0x169   :  { %v158_v31 = vpop.trf.xlu0 }
 0x16a   :  { %475 = vmatmul.msk.f32.vlgmr.msra.gmra.mxu3 %vm167_vm1, %v158_v31 }
 0x16f   :  { %v305_v49 = vpop.f32.mrf.mxu1 }
 0x170   :  { %v384_v10 = vadd.f32 %v383_v9, %v305_v49 }
 0x171   :  { %v159_v32 = vpop.trf.xlu0 }
 0x172   :  { %476 = vmatmul.msk.f32.gmra.mxu3 %vm167_vm1, %v159_v32 }
 0x177   :  { %v308_v52 = vpop.f32.mrf.mxu1 }
 0x178   :  { %v385_v11 = vadd.f32 %v384_v10, %v308_v52 }
 0x179   :  { %v160_v33 = vpop.trf.xlu0 }
 0x17a   :  { %477 = vmatmul.msk.f32.gmra.mxu3 %vm167_vm1, %v160_v33 }
 0x17f   :  { %v311_v55 = vpop.f32.mrf.mxu1 }
 0x180   :  { %v386_v12 = vadd.f32 %v385_v11, %v311_v55 }
 0x181   :  { %v161_v34 = vpop.trf.xlu0 }
 0x182   :  { %478 = vmatmul.msk.f32.gmra.mxu3 %vm167_vm1, %v161_v34 }
 0x187   :  { %v314_v60 = vpop.f32.mrf.mxu1 }
 0x188   :  { %v387_v15 = vadd.f32 %v386_v12, %v314_v60 }
 0x189   :  { %v162_v35 = vpop.trf.xlu0 }
 0x18a   :  { %479 = vmatmul.msk.f32.gmra.mxu3 %vm167_vm1, %v162_v35 }
 0x18f   :  { %v317_v6 = vpop.f32.mrf.mxu1 }
 0x190   :  { %v388_v18 = vadd.f32 %v387_v15, %v317_v6 }
 0x191   :  { %v163_v38 = vpop.trf.xlu0 }
 0x192   :  { %480 = vmatmul.msk.f32.gmra.mxu3 %vm167_vm1, %v163_v38 }
 0x197   :  { %v320_v17 = vpop.f32.mrf.mxu1 }
 0x198   :  { %v389_v19 = vadd.f32 %v388_v18, %v320_v17 }
 0x199   :  { %v164_v40 = vpop.trf.xlu0 }
 0x19a   :  { %481 = vmatmul.msk.f32.gmra.mxu3 %vm167_vm1, %v164_v40 }
 0x1a1   :  { %v165_v41 = vpop.trf.xlu0 }
 0x1a2   :  { %482 = vmatmul.msk.f32.gmra.mxu3 %vm167_vm1, %v165_v41 }
 0x1a5   :  { %v323_v45 = vpop.f32.mrf.mxu2 }
 0x1a6   :  { %v390_v20 = vadd.f32 %v389_v19, %v323_v45 }
 0x1a9   :  { %v166_v42 = vpop.trf.xlu0 }
 0x1aa   :  { %483 = vmatmul.msk.f32.gmra.mxu3 %vm167_vm1, %v166_v42 }
 0x1ad   :  { %v326_v48 = vpop.f32.mrf.mxu2 }
 0x1ae   :  { %v391_v24 = vadd.f32 %v390_v20, %v326_v48 }
 0x1b5   :  { %v329_v51 = vpop.f32.mrf.mxu2 }
 0x1b6   :  { %v392_v26 = vadd.f32 %v391_v24, %v329_v51 }
 0x1bd   :  { %v332_v54 = vpop.f32.mrf.mxu2 }
 0x1be   :  { %v393_v30 = vadd.f32 %v392_v26, %v332_v54 }
 0x1c5   :  { %v335_v58 = vpop.f32.mrf.mxu2 }
 0x1c6   :  { %v394_v31 = vadd.f32 %v393_v30, %v335_v58 }
 0x1cd   :  { %v338_v4 = vpop.f32.mrf.mxu2 }
 0x1ce   :  { %v395_v7 = vadd.f32 %v394_v31, %v338_v4 }
 0x1d5   :  { %v341_v13 = vpop.f32.mrf.mxu2 }
 0x1d6   :  { %v396_v32 = vadd.f32 %v395_v7, %v341_v13 }
 0x1dd   :  { %v344_v25 = vpop.f32.mrf.mxu2 }
 0x1de   :  { %v397_v34 = vadd.f32 %v396_v32, %v344_v25 }
 0x1e5   :  { %v347_v33 = vpop.f32.mrf.mxu2 }
 0x1e6   :  { %v398_v35 = vadd.f32 %v397_v34, %v347_v33 }
 0x1ed   :  { %v350_v57 = vpop.f32.mrf.mxu3 }
 0x1ee   :  { %v399_v37 = vadd.f32 %v398_v35, %v350_v57 }
 0x1f5   :  { %v353_v63 = vpop.f32.mrf.mxu3 }
 0x1f6   :  { %v400_v38 = vadd.f32 %v399_v37, %v353_v63 }
 0x1fd   :  { %v356_v8 = vpop.f32.mrf.mxu3 }
 0x1fe   :  { %v401_v39 = vadd.f32 %v400_v38, %v356_v8 }
 0x205   :  { %v359_v14 = vpop.f32.mrf.mxu3 }
 0x206   :  { %v402_v40 = vadd.f32 %v401_v39, %v359_v14 }
 0x20d   :  { %v362_v21 = vpop.f32.mrf.mxu3 }
 0x20e   :  { %v403_v42 = vadd.f32 %v402_v40, %v362_v21 }
 0x215   :  { %v365_v0 = vpop.f32.mrf.mxu3 }
 0x216   :  { %v404_v43 = vadd.f32 %v403_v42, %v365_v0 }
 0x21d   :  { %v368_v36 = vpop.f32.mrf.mxu3 }
 0x21e   :  { %v405_v44 = vadd.f32 %v404_v43, %v368_v36 }
 0x225   :  { %v371_v41 = vpop.f32.mrf.mxu3 }
 0x226   :  { %v406_v45 = vadd.f32 %v405_v44, %v371_v41 }
 0x22d   :  { %v374_v46 = vpop.f32.mrf.mxu3 }
 0x22e   :  { %v407_v47 = vadd.f32 %v406_v45, %v374_v46 }
 0x230   :  { %v408_v48 = vrot.slane %v407_v47, 4 }
 0x232   :  { %v409_v49 = vadd.f32 %v408_v48, %v407_v47 }
 0x234   :  { %v410_v50 = vrot.slane %v409_v49, 2 }
 0x236   :  { %v411_v51 = vadd.f32 %v410_v50, %v409_v49 }
 0x238   :  { %v412_v52 = vrot.slane %v411_v51, 1 }
 0x23a   :  { %v413_v53 = vadd.f32 %v412_v52, %v411_v51 }
 0x23c   :  { %414 = vst [vmem:[#allocation8] sm:$0xff] %v413_v53 }
 0x23d   :  { %436 = dma.vmem_to_hbm [thread:$0]  %s432_s25, 128, %s434_s28, [#allocation9]  }
 0x23e   :  { %598 = dma.done.wait [#allocation4], 256  }
 0x23f   :  { %599 = vsyncadd [#allocation4], 4294967040 }
 0x240   :  { %600 = dma.done.wait [#allocation9], 128  }
 0x241   :  { %601 = vsyncadd [#allocation9], 4294967168 }
 0x242   :  { %445 = vsyncpa [#allocation3], 1 }
 0x243   :  { %446 = vsyncpa [#allocation6], 1 }
 0x244   :  { %447 = vsyncpa [#allocation4], 1 }
 0x245   :  { %448 = vsyncpa [#allocation9], 1 }

</bundles_post_ra>
